<compile_context>
chip_gen: v5e
topology: v5e:2x2
jax: 0.10.0
libtpu: 0.0.40
codegen_flags: <defaults>
</compile_context>

<pallas_src>
import jax
import jax.numpy as jnp
from jax.experimental import pallas as pl
from jax.experimental.pallas import tpu as pltpu

# TODO(synk): the pretrained torchvision resnet18/resnet50 backbone
# (self.backbone) has no clean self-contained Pallas equivalent; the kernel
# consumes its output feature map directly (shape (N, ex_out_dim, H, W)).


def _conv1x1_bn_kernel(x_ref, w_ref, b_ref, o_ref):
    """One grid step: nb images x one spatial tile.

    x_ref: (nb, C_in, thw) f32   -- tiles read straight from the NCHW map
    w_ref: (C_in, D)       bf16  -- BN-folded 1x1-conv weight (resident)
    b_ref: (1, D)          f32   -- conv_bias*scale + (beta - mean*scale)
    o_ref: (nb, thw, D)    out dtype (bf16 by default)
    """
    w = w_ref[...]
    b = b_ref[...]
    for i in range(x_ref.shape[0]):  # static unroll over grouped images
        # f32 HBM read; cast to bf16 on the VPU just before the MXU.
        x = x_ref[i].astype(jnp.bfloat16)                      # (C_in, thw)
        acc = jax.lax.dot_general(
            x, w,
            dimension_numbers=(((0,), (0,)), ((), ())),        # contract C_in
            preferred_element_type=jnp.float32)                # (thw, D) f32
        o_ref[i] = (acc + b).astype(o_ref.dtype)


def image_feature_extractor_head(features, conv_w, conv_b, bn_gamma, bn_beta,
                                 bn_mean, bn_var, eps=1e-5, thw=None, nb=None,
                                 out_dtype=jnp.bfloat16, vmem_limit_bytes=None):
    """Pallas implementation of conv_1x1 + BN(eval) + permute + flatten.

    features: (N, C_in, H, W)  float32   (NCHW, like the PyTorch module)
    conv_w:   (D, C_in, 1, 1)  float32   (PyTorch Conv2d weight layout)
    conv_b:   (D,)             float32
    bn_*:     (D,)             float32
    returns:  (N, H*W, D)      out_dtype (bf16 default; f32 for exact parity)
    """
    n, c_in, h, w = features.shape
    d_model = conv_w.shape[0]
    hw = h * w

    # ---- Host-side folding (one-time (C_in x D) work, not per-pixel) ----
    # BN(eval): y = (conv(x) - mean) * gamma/sqrt(var+eps) + beta
    scale = bn_gamma / jnp.sqrt(bn_var + eps)                            # (D,)
    w_folded = (conv_w.reshape(d_model, c_in).T
                * scale[None, :]).astype(jnp.bfloat16)                   # (C_in, D)
    b_row = (conv_b * scale + (bn_beta - bn_mean * scale)
             ).reshape(1, d_model).astype(jnp.float32)                   # (1, D)

    # Free view: kernel reads (C_in, thw) tiles straight from NCHW; no
    # wrapper-side transpose or dtype convert (no extra HBM passes).
    x_nchw = features.reshape(n, c_in, hw)

    # Spatial tile: 128-multiple (or full extent for small maps).  512 lanes
    # is already >=85% of HBM roofline and keeps the block footprint inside
    # every chip's VMEM budget; tune per-chip via the thw argument.
    if thw is None:
        thw = hw if hw < 512 else 512
    assert thw == hw or thw % 128 == 0, (
        "thw must be a multiple of 128 or equal to H*W")

    # Small maps (e.g. ResNet 7x7=49): group images per grid step so the
    # per-step overhead amortizes, but keep >=2 blocks on the batch grid axis
    # so v7x's two TensorCores both get work.
    if nb is None:
        nb = 1
        if hw < 128 and n > 1:
            nb = max(1, min(128 // hw, n // 2))

    grid = (pl.cdiv(n, nb), pl.cdiv(hw, thw))

    # Scoped-VMEM budget from the actual block footprint (+50% headroom),
    # clamped to 64 MiB so it is legal on v7x (and well under v5e/v6e 128 MiB).
    if vmem_limit_bytes is None:
        out_bytes = jnp.dtype(out_dtype).itemsize
        blocks = (nb * c_in * thw * 4 * 2            # x tiles (f32, dbl-buffered)
                  + c_in * d_model * 2 * 2           # resident folded weight (bf16)
                  + d_model * 4 * 2                  # bias row
                  + nb * thw * d_model * out_bytes * 2)   # out tiles
        scratch = nb * c_in * thw * 2 + nb * thw * d_model * 4   # bf16 cast + f32 acc
        vmem_limit_bytes = int(min(64 << 20,
                                   max(32 << 20, (blocks + scratch) * 3 // 2)))

    out = pl.pallas_call(
        _conv1x1_bn_kernel,
        out_shape=jax.ShapeDtypeStruct((n, hw, d_model), out_dtype),
        grid_spec=pltpu.PrefetchScalarGridSpec(
            num_scalar_prefetch=0,
            grid=grid,
            in_specs=[
                # (nb, C_in, thw) tile straight from the NCHW feature map.
                pl.BlockSpec((nb, c_in, thw), lambda b, j: (b, 0, j)),
                # Folded weight and bias: constant index -> resident.
                pl.BlockSpec((c_in, d_model), lambda b, j: (0, 0)),
                pl.BlockSpec((1, d_model), lambda b, j: (0, 0)),
            ],
            out_specs=pl.BlockSpec((nb, thw, d_model), lambda b, j: (b, j, 0)),
        ),
        compiler_params=pltpu.CompilerParams(
            dimension_semantics=("parallel", "parallel"),
            vmem_limit_bytes=vmem_limit_bytes),
    )(x_nchw, w_folded, b_row)

    # out == module's out.permute(0,2,3,1).flatten(1,2):  (N, H*W, D)
    return out


def _reference(features, conv_w, conv_b, bn_gamma, bn_beta, bn_mean, bn_var, eps=1e-5):
    """Pure-JAX f32 reference mirroring the PyTorch forward (eval-mode BN)."""
    n, c_in, h, w = features.shape
    d_model = conv_w.shape[0]
    x_nhwc = jnp.transpose(features, (0, 2, 3, 1))                 # (N,H,W,C)
    out = jnp.einsum('nhwc,dc->nhwd', x_nhwc, conv_w.reshape(d_model, c_in)) + conv_b
    out = (out - bn_mean) / jnp.sqrt(bn_var + eps) * bn_gamma + bn_beta
    return out.reshape(n, h * w, d_model)


if __name__ == "__main__":
    # Small synthetic shapes consistent with the module:
    #   batch=2, backbone output channels (ex_out_dim)=64, spatial 8x8, d_model=32
    N, C_IN, H, W = 2, 64, 8, 8
    D_MODEL = 32

    key = jax.random.PRNGKey(0)
    k_feat, k_w, k_b, k_g, k_be, k_m, k_v = jax.random.split(key, 7)

    features = jax.random.normal(k_feat, (N, C_IN, H, W), dtype=jnp.float32)

    # Deterministic parameter init (shapes from the module's __init__).
    conv_w = jax.random.normal(k_w, (D_MODEL, C_IN, 1, 1), dtype=jnp.float32) * 0.05
    conv_b = jax.random.normal(k_b, (D_MODEL,), dtype=jnp.float32) * 0.1
    bn_gamma = 1.0 + 0.1 * jax.random.normal(k_g, (D_MODEL,), dtype=jnp.float32)
    bn_beta = 0.1 * jax.random.normal(k_be, (D_MODEL,), dtype=jnp.float32)
    bn_mean = 0.1 * jax.random.normal(k_m, (D_MODEL,), dtype=jnp.float32)
    bn_var = jnp.abs(jax.random.normal(k_v, (D_MODEL,), dtype=jnp.float32)) + 0.5

    out = image_feature_extractor_head(
        features, conv_w, conv_b, bn_gamma, bn_beta, bn_mean, bn_var)
    out = jax.block_until_ready(out)

    ref = _reference(features, conv_w, conv_b, bn_gamma, bn_beta, bn_mean, bn_var)
    assert out.shape == (N, H * W, D_MODEL), out.shape
    # Tolerance loosened vs. a pure-f32 path: bf16 x/weight into the MXU and a
    # bf16 output store (f32 accumulation and f32 bias keep the error bounded).
    assert jnp.allclose(out.astype(jnp.float32), ref, atol=5e-2, rtol=5e-2), \
        float(jnp.max(jnp.abs(out.astype(jnp.float32) - ref)))

    print("KERNEL_OK")
</pallas_src>

<mosaic_0001>
module attributes {stable_mosaic.version = 11 : i64} {
  func.func @_conv1x1_bn_kernel(%arg0: i32, %arg1: i32, %arg2: memref<1x64x64xf32, #tpu.memory_space<vmem>>, %arg3: memref<64x32xbf16, #tpu.memory_space<vmem>>, %arg4: memref<1x32xf32, #tpu.memory_space<vmem>>, %arg5: memref<1x64x32xbf16, #tpu.memory_space<vmem>>) attributes {dimension_semantics = [#tpu.dimension_semantics<parallel>, #tpu.dimension_semantics<parallel>], iteration_bounds = array<i64: 2, 1>, scalar_prefetch = 0 : i64, scratch_operands = 0 : i64, tpu.core_type = #tpu.core_type<tc>, window_params = [{transform_indices = @transform_0, window_bounds = array<i64: 1, 64, 64>}, {pipeline_mode = #tpu.pipeline_mode<synchronous>, transform_indices = @transform_1, window_bounds = array<i64: 64, 32>}, {pipeline_mode = #tpu.pipeline_mode<synchronous>, transform_indices = @transform_2, window_bounds = array<i64: 1, 32>}, {transform_indices = @transform_3, window_bounds = array<i64: 1, 64, 32>}]} {
    %c0 = arith.constant 0 : index
    %c0_0 = arith.constant 0 : index
    %0 = vector.load %arg3[%c0, %c0_0] : memref<64x32xbf16, #tpu.memory_space<vmem>>, vector<64x32xbf16>
    %c0_1 = arith.constant 0 : index
    %c0_2 = arith.constant 0 : index
    %1 = vector.load %arg4[%c0_1, %c0_2] : memref<1x32xf32, #tpu.memory_space<vmem>>, vector<1x32xf32>
    %c0_3 = arith.constant 0 : index
    %c0_4 = arith.constant 0 : index
    %c0_5 = arith.constant 0 : index
    %2 = vector.load %arg2[%c0_3, %c0_4, %c0_5] : memref<1x64x64xf32, #tpu.memory_space<vmem>>, vector<1x64x64xf32>
    %3 = vector.shape_cast %2 : vector<1x64x64xf32> to vector<64x64xf32>
    %4 = arith.truncf %3 : vector<64x64xf32> to vector<64x64xbf16>
    %cst = arith.constant dense<0.000000e+00> : vector<64x32xf32>
    %5 = tpu.matmul %4, %0, %cst {dimension_numbers = #tpu.dot_dimension_numbers<[0], [0], [1], [1], [0, 1, 1, 1], [], []>} : vector<64x64xbf16>, vector<64x32xbf16>, vector<64x32xf32> -> vector<64x32xf32>
    %6 = vector.broadcast %1 : vector<1x32xf32> to vector<64x32xf32>
    %7 = arith.addf %5, %6 : vector<64x32xf32>
    %8 = arith.truncf %7 : vector<64x32xf32> to vector<64x32xbf16>
    %c0_6 = arith.constant 0 : index
    %c0_7 = arith.constant 0 : index
    %c0_8 = arith.constant 0 : index
    %9 = vector.load %arg5[%c0_6, %c0_7, %c0_8] : memref<1x64x32xbf16, #tpu.memory_space<vmem>>, vector<1x64x32xbf16>
    %10 = vector.shape_cast %9 : vector<1x64x32xbf16> to vector<64x32xbf16>
    %11 = vector.shape_cast %8 : vector<64x32xbf16> to vector<1x64x32xbf16>
    tpu.vector_store %arg5[%c0_6, %c0_7, %c0_8], %11 {strides = array<i32>} : memref<1x64x32xbf16, #tpu.memory_space<vmem>>, vector<1x64x32xbf16>,
    return
  }
  func.func @transform_0(%arg0: i32, %arg1: i32) -> (i32, i32, i32) {
    %c0_i32 = arith.constant 0 : i32
    %c0_i32_0 = arith.constant 0 : i32
    return %arg0, %c0_i32, %arg1 : i32, i32, i32
  }
  func.func @transform_1(%arg0: i32, %arg1: i32) -> (i32, i32) {
    %c0_i32 = arith.constant 0 : i32
    %c0_i32_0 = arith.constant 0 : i32
    %c0_i32_1 = arith.constant 0 : i32
    return %c0_i32, %c0_i32_0 : i32, i32
  }
  func.func @transform_2(%arg0: i32, %arg1: i32) -> (i32, i32) {
    %c0_i32 = arith.constant 0 : i32
    %c0_i32_0 = arith.constant 0 : i32
    %c0_i32_1 = arith.constant 0 : i32
    return %c0_i32, %c0_i32_0 : i32, i32
  }
  func.func @transform_3(%arg0: i32, %arg1: i32) -> (i32, i32, i32) {
    %c0_i32 = arith.constant 0 : i32
    %c0_i32_0 = arith.constant 0 : i32
    return %arg0, %arg1, %c0_i32 : i32, i32, i32
  }
}

</mosaic_0001>

<bundles_post_ra>
// kernel: tpu_custom_call.1
= control target key start
LH: loop header
LB: loop body
LE: loop exit
PB: predicated region body
PF: predicated region fallthrough
CT: control target
= control target key end

     0   :  { %8 = vsyncpa [#allocation3], 0  ;;  %s782_s0 = inlined_call_operand.hbm [shape: f32[2,64,64], index: 0, kind: input, shape index: {}]   ;;  %s783_s1 = inlined_call_operand.vmem [shape: bf16[64,32], index: 1, kind: input, shape index: {}]   ;;  %s784_s2 = inlined_call_operand.vmem [shape: f32[1,32], index: 2, kind: input, shape index: {}]   ;;  %s785_s3 = inlined_call_operand.vmem [shape: bf16[2,64,32], index: 3, kind: output, shape index: {}]  }
   0x1   :  { %10 = vsyncpa [#allocation3 + $0x1], 0  ;;  %s651_s12 = smov 0   ;;  %s653_s13 = smov 0  }
   0x2   :  { %s655_s14 = smov 0   ;;  %s657_s15 = smov 0  }
   0x3   :  { %s659_s16 = smov 0   ;;  %s661_s17 = smov 0  }
   0x4 LB: > { %s437_s18 = sadd.s32 4294967295, %s627_s17   ;;  %s28_s19 = sadd.s32 1, %s623_s16  ;;  %s627_s17 = sphi %s661_s17, %s16_s17   ;;  %s623_s16 = sphi %s659_s16, %s792_s16   ;;  %s619_s15 = sphi %s657_s15, %s791_s15   ;;  %s615_s14 = sphi %s655_s14, %s790_s14   ;;  %s611_s13 = sphi %s653_s13, %s789_s13   ;;  %s607_s12 = sphi %s651_s12, %s788_s12  }
   0x5   : > { %p30_p0 = scmp.ge.s32.totalorder %s28_s19, 2  ;;  %s37_s20 = sadd.s32 1, %s615_s14 }
   0x6   : > { %p44_p1 = scmp.ne.s32.totalorder %s615_s14, %s611_s13  ;;  %p45_p2 = scmp.eq.s32.totalorder %s627_s17, 0 }
   0x7   : > { %s794_s19 = smov (%p30_p0, %s28_s19), 0  ;;  %p50_p4 = scmp.ne.s32.totalorder %s611_s13, %s607_s12 }
   0x8   : > { %p687_p3 = por %p45_p2, %p44_p1  ;;  %s32_s22 = ssub.s32 %s623_s16, %s794_s19 }
   0x9   : > { %p51_p5 = scmp.eq.s32.totalorder %s437_s18, 0  ;;  %p35_p6 = scmp.eq.s32.totalorder %s32_s22, 0 }
   0xa   : > { %p494_p8 = scmp.lt.s32.totalorder %s627_s17, 2  ;;  %s150_s25 = sand.u32 1, %s615_s14  }
   0xb   : > { %p694_p7 = por %p51_p5, %p50_p4  ;;  %s470_s26 = sshll.u32 %s623_s16, 6 }
   0xc   : > { %s700_s24 = scalar_select %p35_p6, %s615_s14, %s37_s20  }
   0xd   : > { %s441_s27 = sshll.u32 %s150_s25, 6  ;;  %s160_s30 = scalar_lea.hbm %s782_s0, %s470_s26 }
   0xe   : > { %s161_s4 = sshll.u32 %s160_s30, 4  ;;  %s154_s5 = scalar_lea.vmem [#allocation2], %s441_s27  ;;  %s162_s4 = int_to_ptr.hbm [resolvable:$true] %s161_s4 }
   0xf   : > { %s163_s6 = sshll.u32 %s154_s5, 4  ;;  %p491_p9 = pnand %p494_p8, %p687_p3  ;;  %s164_s6 = int_to_ptr.vmem [resolvable:$true] %s163_s6 }
  0x10   : > { %p444_p10 = scmp.ge.s32.totalorder %s627_s17, 1  ;;  %p171_p11 = scmp.lt.s32.totalorder %s627_s17, 3 }
  0x11   : > { %s151_s7 = scalar_lea.sflag [#allocation3], %s150_s25  ;;  %s629_s8 = smov 128  }
  0x12   : > { %s630_s9 = smov 8   ;;  %p172_p12 = pnand %p444_p10, %p171_p11 }
  0x13   : > { %493 = dma.hbm_to_vmem [thread:$0]  (!%p491_p9), %s162_s4, 1024, %s164_s6, %s151_s7, %s629_s8, %s629_s8, %s630_s9  }
  0x14   : > { %175 = sbr.rel (%p172_p12) target bundleno = 395 (0x18b), region = 32  ;;  %s177_s10 = sand.u32 (!%p172_p12), 1, %s611_s13  }
  0x15   : > { %s445_s11 = sshll.u32 (!%p172_p12), %s177_s10, 6  ;;  %s178_s12 = scalar_lea.sflag (!%p172_p12), [#allocation3], %s177_s10 }
  0x16   : > { %s712_s18 = scalar_lea.vmem (!%p172_p12), [#allocation2], %s445_s11 }
  0x19   : > { %602 = dma.done.wait (%p694_p7), %s178_s12, 1024  }
  0x1a   : > { %604 = vsyncadd (%p694_p7), %s178_s12, 4294966272  ;;  %v229_v0 = vld [vmem:[%s712_s18] sm:$0xff]  ;;  %v230_v1 = vld [vmem:[%s712_s18 + $0x8] sm:$0xff]  ;;  %vm284_vm0 = vcmask 523264   ;;  %p210_p13 = scmp.lt.s32.totalorder %s619_s15, 1  ;;  %vm334_vm1 = vcmask 257024  }
  0x1b   : > { %v237_v2 = vpack.c.bf16 %v230_v1, %v229_v0  ;;  %v231_v3 = vld [vmem:[%s712_s18 + $0x10] sm:$0xff]  ;;  %v232_v4 = vld [vmem:[%s712_s18 + $0x18] sm:$0xff]  ;;  %v473_v8 = vld [vmem:[%s783_s1 + $0x8] sm:$0xff] }
  0x1c   : > { %v238_v5 = vpack.c.bf16 %v232_v4, %v231_v3  ;;  %v475_v6 = vld [vmem:[%s783_s1 + $0x18] sm:$0xff]  ;;  %v474_v7 = vld [vmem:[%s783_s1 + $0x10] sm:$0xff]  ;;  %v233_v9 = vld [vmem:[%s712_s18 + $0x20] sm:$0xff]  ;;  %s796_s15 = smov (!%p210_p13, %s619_s15), 1 }
  0x1d   : > { %244 = vxpose.xlu0.c.b16.start [1/4] (short) (narrow) %v237_v2, 64  ;;  %301 = vmatpush.bf16.msra.mxu0 %v475_v6  ;;  %v234_v10 = vld [vmem:[%s712_s18 + $0x28] sm:$0xff]  ;;  %v472_v11 = vld [vmem:[%s783_s1] sm:$0xff]  ;;  %v235_v13 = vld [vmem:[%s712_s18 + $0x30] sm:$0xff]  ;;  %s471_s4 = sshll.u32 %s796_s15, 5 }
  0x1e   : > { %476 = vmatpush.bf16.msra.mxu1 %v475_v6  ;;  %477 = vmatpush.bf16.msra.mxu2 %v475_v6  ;;  %v239_v12 = vpack.c.bf16 %v234_v10, %v233_v9  ;;  %v236_v14 = vld [vmem:[%s712_s18 + $0x38] sm:$0xff]  ;;  %v546_v20 = vld [vmem:[%s784_s2] ss:$0 sm:$0xff]  ;;  %s746_s7 = scalar_lea.vmem %s785_s3, %s471_s4 }
  0x1f   : > { %478 = vmatpush.bf16.msra.mxu3 %v475_v6  ;;  %v240_v15 = vpack.c.bf16 %v236_v14, %v235_v13 }
  0x21   : > { %302 = vmatpush.bf16.msra.mxu0 %v474_v7 }
  0x22   : > { %479 = vmatpush.bf16.msra.mxu1 %v474_v7  ;;  %480 = vmatpush.bf16.msra.mxu2 %v474_v7 }
  0x23   : > { %481 = vmatpush.bf16.msra.mxu3 %v474_v7 }
  0x25   : > { %303 = vmatpush.bf16.msra.mxu0 %v473_v8 }
  0x26   : > { %482 = vmatpush.bf16.msra.mxu1 %v473_v8  ;;  %483 = vmatpush.bf16.msra.mxu2 %v473_v8 }
  0x27   : > { %484 = vmatpush.bf16.msra.mxu3 %v473_v8 }
  0x29   : > { %304 = vmatpush.bf16.msra.mxu0 %v472_v11 }
  0x2a   : > { %485 = vmatpush.bf16.msra.mxu1 %v472_v11  ;;  %486 = vmatpush.bf16.msra.mxu2 %v472_v11 }
  0x2b   : > { %487 = vmatpush.bf16.msra.mxu3 %v472_v11 }
  0x2d   : > { %245 = vxpose.xlu0.c.b16.cont [2/4] (short) (narrow) %v238_v5, 64 }
  0x3d   : > { %246 = vxpose.xlu0.c.b16.cont [3/4] (short) (narrow) %v239_v12, 64 }
  0x4d   : > { %247 = vxpose.xlu0.c.b16.end [4/4] (short) (narrow) %v240_v15, 64 }
  0xc9   : > { %v252_v16 = vpop.trf.xlu0 }
  0xca   : > { %464 = vmatmul.msk.bf16.vlgmr.msra.gmra.mxu0 %vm284_vm0, %v252_v16 }
  0xd9   : > { %v253_v17 = vpop.trf.xlu0 }
  0xda   : > { %465 = vmatmul.msk.bf16.vlgmr.msra.gmra.mxu1 %vm284_vm0, %v253_v17 }
  0xe9   : > { %v254_v18 = vpop.trf.xlu0 }
  0xea   : > { %466 = vmatmul.msk.bf16.vlgmr.msra.gmra.mxu2 %vm284_vm0, %v254_v18 }
  0xf9   : > { %v255_v19 = vpop.trf.xlu0 }
  0xfa   : > { %467 = vmatmul.msk.bf16.vlgmr.msra.gmra.mxu3 %vm284_vm0, %v255_v19 }
 0x147   : > { %v306_v21 = vpop.f32.mrf.mxu0 }
 0x148   : > { %v307_v22 = vadd.f32 %v546_v20, %v306_v21 }
 0x14a   : > { %v326_v23 = vpack.c.bf16 %v307_v22, %v307_v22 }
 0x14c   : > { %335 = vst.msk [vmem:[%s746_s7] sm:$0xf] %vm334_vm1, %v326_v23 }
 0x14f   : > { %v308_v24 = vpop.f32.mrf.mxu0 }
 0x150   : > { %v309_v25 = vadd.f32 %v546_v20, %v308_v24 }
 0x152   : > { %v327_v26 = vpack.c.bf16 %v309_v25, %v309_v25 }
 0x154   : > { %336 = vst.msk [vmem:[%s746_s7 + $0x4] sm:$0xf] %vm334_vm1, %v327_v26 }
 0x157   : > { %v311_v27 = vpop.f32.mrf.mxu1 }
 0x158   : > { %v312_v28 = vadd.f32 %v546_v20, %v311_v27 }
 0x15a   : > { %v328_v29 = vpack.c.bf16 %v312_v28, %v312_v28 }
 0x15c   : > { %337 = vst.msk [vmem:[%s746_s7 + $0x8] sm:$0xf] %vm334_vm1, %v328_v29 }
 0x15f   : > { %v313_v30 = vpop.f32.mrf.mxu1 }
 0x160   : > { %v314_v31 = vadd.f32 %v546_v20, %v313_v30 }
 0x162   : > { %v329_v32 = vpack.c.bf16 %v314_v31, %v314_v31 }
 0x164   : > { %338 = vst.msk [vmem:[%s746_s7 + $0xc] sm:$0xf] %vm334_vm1, %v329_v32 }
 0x16d   : > { %v316_v33 = vpop.f32.mrf.mxu2 }
 0x16e   : > { %v317_v34 = vadd.f32 %v546_v20, %v316_v33 }
 0x170   : > { %v330_v35 = vpack.c.bf16 %v317_v34, %v317_v34 }
 0x172   : > { %339 = vst.msk [vmem:[%s746_s7 + $0x10] sm:$0xf] %vm334_vm1, %v330_v35 }
 0x175   : > { %v318_v36 = vpop.f32.mrf.mxu2 }
 0x176   : > { %v319_v37 = vadd.f32 %v546_v20, %v318_v36 }
 0x178   : > { %v331_v38 = vpack.c.bf16 %v319_v37, %v319_v37 }
 0x17a   : > { %340 = vst.msk [vmem:[%s746_s7 + $0x14] sm:$0xf] %vm334_vm1, %v331_v38 }
 0x17d   : > { %v321_v39 = vpop.f32.mrf.mxu3 }
 0x17e   : > { %v322_v40 = vadd.f32 %v546_v20, %v321_v39 }
 0x180   : > { %v332_v41 = vpack.c.bf16 %v322_v40, %v322_v40 }
 0x182   : > { %341 = vst.msk [vmem:[%s746_s7 + $0x18] sm:$0xf] %vm334_vm1, %v332_v41 }
 0x185   : > { %v323_v42 = vpop.f32.mrf.mxu3 }
 0x186   : > { %v324_v43 = vadd.f32 %v546_v20, %v323_v42 }
 0x188   : > { %v333_v44 = vpack.c.bf16 %v324_v43, %v324_v43 }
 0x18a   : > { %342 = vst.msk [vmem:[%s746_s7 + $0x1c] sm:$0xf] %vm334_vm1, %v333_v44 }
 0x18b PF: > { %s16_s17 = sadd.s32 1, %s627_s17   ;;  %s788_s12 = smov %s611_s13 }
 0x18c   : > { %p13_p0 = scmp.ge.s32.totalorder %s16_s17, 4   ;;  %s789_s13 = smov %s615_s14 }
 0x18d   : > { %s790_s14 = smov %s700_s24  ;;  %s791_s15 = smov %s623_s16 }
 0x18e   : > { %s792_s16 = smov %s794_s19  ;;  %15 = sbr.rel (!%p13_p0) target bundleno = 4 (0x4), region = 72 }
 0x193   :  { %373 = vsyncpa [#allocation3], 1 }
 0x194   :  { %375 = vsyncpa [#allocation3 + $0x1], 1 }

</bundles_post_ra>
